<compile_context>
chip_gen: v7x
topology: tpu7x:2x2x1
jax: 0.10.0
libtpu: 0.0.40
codegen_flags: <defaults>
</compile_context>

<pallas_src>
import jax
import jax.numpy as jnp
from jax.experimental import pallas as pl
from jax.experimental.pallas import tpu as pltpu


# ----------------------------- fused Pallas kernel ---------------------------

def _make_fused_kernel(n_layers):
    """Kernel closure over the (static) number of conv layers."""

    def kernel(*refs):
        # refs = x, [w, b] * n_layers, head_w, head_b, out
        x_ref = refs[0]
        layer_refs = refs[1:1 + 2 * n_layers]
        head_w_ref, head_b_ref, o_ref = refs[1 + 2 * n_layers:]

        h = x_ref[...].astype(jnp.float32)                 # (C_in, L), L on lanes
        for li in range(n_layers):
            w_ref, b_ref = layer_refs[2 * li:2 * li + 2]
            K = w_ref.shape[0]
            L_out = h.shape[1] - K + 1
            # Valid conv: sum over K taps of (C_out, C_in) @ (C_in, L_out) on the MXU.
            acc = jnp.dot(w_ref[0], h[:, :L_out],
                          preferred_element_type=jnp.float32)
            for k in range(1, K):
                acc = acc + jnp.dot(w_ref[k], h[:, k:k + L_out],
                                    preferred_element_type=jnp.float32)
            # Conv bias (with upstream BN shift pre-folded) + ReLU; Dropout = id.
            h = jnp.maximum(acc + b_ref[...], 0.0)

        # 1x1 conv head (last BN pre-folded): (n_domains, C) @ (C, L_out) + bias.
        y = jnp.dot(head_w_ref[...], h,
                    preferred_element_type=jnp.float32) + head_b_ref[...]

        # LogSoftmax over the channel axis (axis 0, n_domains rows) using
        # elementwise row ops (no cross-sublane reductions on a mostly-padded axis).
        n_domains = y.shape[0]
        m = y[0:1, :]
        for d in range(1, n_domains):
            m = jnp.maximum(m, y[d:d + 1, :])
        z = y - m
        p = jnp.exp(z)
        s = p[0:1, :]
        for d in range(1, n_domains):
            s = s + p[d:d + 1, :]
        o_ref[...] = (z - jnp.log(s)).astype(o_ref.dtype)

    return kernel


# ------------------------------- wrapper --------------------------------------

def fcn_domain_classifier_forward(features, layer_params, head_w, head_b,
                                  eps=1e-5):
    """features: (N, C_in, L) in native PyTorch NCL layout.

    layer_params: list of (w, b, gamma, beta, running_mean, running_var) with
                  w in PyTorch Conv1d layout (C_out, C_in, K).
    head_w:       (n_domains, C_last, 1) PyTorch 1x1 Conv1d weight.
    head_b:       (n_domains,)
    Returns (N, n_domains, L_out) log-probabilities (LogSoftmax over dim=1).
    """
    N, C_in0, L = features.shape
    n_layers = len(layer_params)

    inputs = [features]
    in_specs = [pl.BlockSpec((None, C_in0, L), lambda n: (n, 0, 0))]

    # Fold each layer's BN (applied after its ReLU) into the FOLLOWING conv /
    # head: conv(scale*x + shift) = conv'(x) with w' = w*scale, b' = b + w.shift.
    L_cur = L
    prev_scale = None
    prev_shift = None
    for (w, b, gamma, beta, mean, var) in layer_params:
        C_out, C_in, K = w.shape
        if prev_scale is not None:
            b = b + jnp.einsum('oik,i->o', w, prev_shift)
            w = w * prev_scale[None, :, None]
        scale = gamma * jax.lax.rsqrt(var + eps)
        shift = beta - mean * scale
        prev_scale, prev_shift = scale, shift

        wk = jnp.transpose(w, (2, 0, 1))                   # (K, C_out, C_in)
        inputs += [wk, b.reshape(C_out, 1)]
        in_specs += [
            pl.BlockSpec((K, C_out, C_in), lambda n: (0, 0, 0)),
            pl.BlockSpec((C_out, 1), lambda n: (0, 0)),
        ]
        L_cur = L_cur - K + 1

    n_domains, C_last = head_w.shape[0], head_w.shape[1]
    hw = head_w[:, :, 0]                                   # (n_domains, C_last)
    hb = head_b
    if prev_scale is not None:
        hb = hb + hw @ prev_shift
        hw = hw * prev_scale[None, :]
    inputs += [hw, hb.reshape(n_domains, 1)]
    in_specs += [
        pl.BlockSpec((n_domains, C_last), lambda n: (0, 0)),
        pl.BlockSpec((n_domains, 1), lambda n: (0, 0)),
    ]

    out_shape = jax.ShapeDtypeStruct((N, n_domains, L_cur), jnp.float32)
    out_spec = pl.BlockSpec((None, n_domains, L_cur), lambda n: (n, 0, 0))

    return pl.pallas_call(
        _make_fused_kernel(n_layers),
        out_shape=out_shape,
        grid=(N,),
        in_specs=in_specs,
        out_specs=out_spec,
        compiler_params=pltpu.CompilerParams(
            dimension_semantics=("parallel",)),
    )(*inputs)


# ------------------------------ pure-JAX reference ----------------------------

def _reference(features, layer_params, head_w, head_b, eps=1e-5):
    h = features                                            # (N, C, L)
    for (w, b, g, be, mu, var) in layer_params:
        C_out, C_in, K = w.shape
        L_out = h.shape[2] - K + 1
        acc = jnp.zeros((h.shape[0], C_out, L_out), jnp.float32)
        for k in range(K):
            acc = acc + jnp.einsum('oi,nil->nol', w[:, :, k], h[:, :, k:k + L_out])
        acc = jnp.maximum(acc + b[None, :, None], 0.0)
        h = ((acc - mu[None, :, None])
             * (g[None, :, None] * jax.lax.rsqrt(var[None, :, None] + eps))
             + be[None, :, None])
    y = jnp.einsum('oi,nil->nol', head_w[:, :, 0], h) + head_b[None, :, None]
    return jax.nn.log_softmax(y, axis=1)


# --------------------------------- main ----------------------------------------

if __name__ == "__main__":
    # Module config (small, consistent with the PyTorch __init__).
    input_dims = [4, 8]
    channels = [8, 16]
    kernel_sizes = [3, 3]
    n_domains = 3
    N, L = 2, 16

    key = jax.random.PRNGKey(0)
    keys = jax.random.split(key, 16)

    layer_params = []
    ki = 0
    for c_in, c_out, k in zip(input_dims, channels, kernel_sizes):
        w = 0.1 * jax.random.normal(keys[ki], (c_out, c_in, k), jnp.float32); ki += 1
        b = 0.1 * jax.random.normal(keys[ki], (c_out,), jnp.float32); ki += 1
        gamma = 1.0 + 0.1 * jax.random.normal(keys[ki], (c_out,), jnp.float32); ki += 1
        beta = 0.1 * jax.random.normal(keys[ki], (c_out,), jnp.float32); ki += 1
        mean = 0.1 * jax.random.normal(keys[ki], (c_out,), jnp.float32); ki += 1
        var = 1.0 + 0.1 * jnp.abs(jax.random.normal(keys[ki], (c_out,), jnp.float32)); ki += 1
        layer_params.append((w, b, gamma, beta, mean, var))

    head_w = 0.1 * jax.random.normal(keys[ki], (n_domains, channels[-1], 1), jnp.float32); ki += 1
    head_b = 0.1 * jax.random.normal(keys[ki], (n_domains,), jnp.float32); ki += 1

    features = jax.random.normal(keys[-1], (N, input_dims[0], L), jnp.float32)  # NCL

    fwd = jax.jit(lambda x: fcn_domain_classifier_forward(x, layer_params, head_w, head_b))
    out = jax.block_until_ready(fwd(features))

    expected_L = L - sum(k - 1 for k in kernel_sizes)
    assert out.shape == (N, n_domains, expected_L), out.shape

    # LogSoftmax sanity: per-position channel probs sum to 1.
    probs = jnp.exp(out).sum(axis=1)
    assert bool(jnp.all(jnp.abs(probs - 1.0) < 1e-4))

    # Numerical check against a pure-JAX reference of the same forward pass.
    ref = _reference(features, layer_params, head_w, head_b)
    assert bool(jnp.allclose(out, ref, atol=2e-4, rtol=1e-4)), float(jnp.max(jnp.abs(out - ref)))

    print("KERNEL_OK")
</pallas_src>

<mosaic_0001>
module attributes {stable_mosaic.version = 11 : i64} {
  func.func @kernel(%arg0: i32, %arg1: memref<1x4x16xf32, #tpu.memory_space<vmem>>, %arg2: memref<3x8x4xf32, #tpu.memory_space<vmem>>, %arg3: memref<8x1xf32, #tpu.memory_space<vmem>>, %arg4: memref<3x16x8xf32, #tpu.memory_space<vmem>>, %arg5: memref<16x1xf32, #tpu.memory_space<vmem>>, %arg6: memref<3x16xf32, #tpu.memory_space<vmem>>, %arg7: memref<3x1xf32, #tpu.memory_space<vmem>>, %arg8: memref<1x3x12xf32, #tpu.memory_space<vmem>>) attributes {dimension_semantics = [#tpu.dimension_semantics<parallel>], iteration_bounds = array<i64: 2>, scalar_prefetch = 0 : i64, scratch_operands = 0 : i64, tpu.core_type = #tpu.core_type<tc>, window_params = [{transform_indices = @transform_0, window_bounds = array<i64: 1, 4, 16>}, {pipeline_mode = #tpu.pipeline_mode<synchronous>, transform_indices = @transform_1, window_bounds = array<i64: 3, 8, 4>}, {pipeline_mode = #tpu.pipeline_mode<synchronous>, transform_indices = @transform_2, window_bounds = array<i64: 8, 1>}, {pipeline_mode = #tpu.pipeline_mode<synchronous>, transform_indices = @transform_3, window_bounds = array<i64: 3, 16, 8>}, {pipeline_mode = #tpu.pipeline_mode<synchronous>, transform_indices = @transform_4, window_bounds = array<i64: 16, 1>}, {pipeline_mode = #tpu.pipeline_mode<synchronous>, transform_indices = @transform_5, window_bounds = array<i64: 3, 16>}, {pipeline_mode = #tpu.pipeline_mode<synchronous>, transform_indices = @transform_6, window_bounds = array<i64: 3, 1>}, {transform_indices = @transform_7, window_bounds = array<i64: 1, 3, 12>}]} {
    %c0 = arith.constant 0 : index
    %c0_0 = arith.constant 0 : index
    %c0_1 = arith.constant 0 : index
    %0 = vector.load %arg1[%c0, %c0_0, %c0_1] : memref<1x4x16xf32, #tpu.memory_space<vmem>>, vector<1x4x16xf32>
    %1 = vector.shape_cast %0 : vector<1x4x16xf32> to vector<4x16xf32>
    %c0_2 = arith.constant 0 : index
    %c0_3 = arith.constant 0 : index
    %c0_4 = arith.constant 0 : index
    %2 = vector.load %arg2[%c0_2, %c0_3, %c0_4] : memref<3x8x4xf32, #tpu.memory_space<vmem>>, vector<1x8x4xf32>
    %3 = vector.shape_cast %2 : vector<1x8x4xf32> to vector<8x4xf32>
    %4 = vector.extract_strided_slice %1 {offsets = [0, 0], sizes = [4, 14], strides = [1, 1]} : vector<4x16xf32> to vector<4x14xf32>
    %cst = arith.constant dense<0.000000e+00> : vector<8x14xf32>
    %5 = tpu.matmul %3, %4, %cst {dimension_numbers = #tpu.dot_dimension_numbers<[1], [0], [0], [1], [0, 0, 1, 1], [], []>} : vector<8x4xf32>, vector<4x14xf32>, vector<8x14xf32> -> vector<8x14xf32>
    %c1 = arith.constant 1 : index
    %c0_5 = arith.constant 0 : index
    %c0_6 = arith.constant 0 : index
    %6 = vector.load %arg2[%c1, %c0_5, %c0_6] : memref<3x8x4xf32, #tpu.memory_space<vmem>>, vector<1x8x4xf32>
    %7 = vector.shape_cast %6 : vector<1x8x4xf32> to vector<8x4xf32>
    %8 = vector.extract_strided_slice %1 {offsets = [0, 1], sizes = [4, 14], strides = [1, 1]} : vector<4x16xf32> to vector<4x14xf32>
    %cst_7 = arith.constant dense<0.000000e+00> : vector<8x14xf32>
    %9 = tpu.matmul %7, %8, %cst_7 {dimension_numbers = #tpu.dot_dimension_numbers<[1], [0], [0], [1], [0, 0, 1, 1], [], []>} : vector<8x4xf32>, vector<4x14xf32>, vector<8x14xf32> -> vector<8x14xf32>
    %10 = arith.addf %5, %9 : vector<8x14xf32>
    %c2 = arith.constant 2 : index
    %c0_8 = arith.constant 0 : index
    %c0_9 = arith.constant 0 : index
    %11 = vector.load %arg2[%c2, %c0_8, %c0_9] : memref<3x8x4xf32, #tpu.memory_space<vmem>>, vector<1x8x4xf32>
    %12 = vector.shape_cast %11 : vector<1x8x4xf32> to vector<8x4xf32>
    %13 = vector.extract_strided_slice %1 {offsets = [0, 2], sizes = [4, 14], strides = [1, 1]} : vector<4x16xf32> to vector<4x14xf32>
    %cst_10 = arith.constant dense<0.000000e+00> : vector<8x14xf32>
    %14 = tpu.matmul %12, %13, %cst_10 {dimension_numbers = #tpu.dot_dimension_numbers<[1], [0], [0], [1], [0, 0, 1, 1], [], []>} : vector<8x4xf32>, vector<4x14xf32>, vector<8x14xf32> -> vector<8x14xf32>
    %15 = arith.addf %10, %14 : vector<8x14xf32>
    %c0_11 = arith.constant 0 : index
    %c0_12 = arith.constant 0 : index
    %16 = vector.load %arg3[%c0_11, %c0_12] : memref<8x1xf32, #tpu.memory_space<vmem>>, vector<8x1xf32>
    %17 = vector.broadcast %16 : vector<8x1xf32> to vector<8x14xf32>
    %18 = arith.addf %15, %17 : vector<8x14xf32>
    %cst_13 = arith.constant 0.000000e+00 : f32
    %19 = vector.broadcast %cst_13 : f32 to vector<8x14xf32>
    %20 = arith.maximumf %18, %19 : vector<8x14xf32>
    %c0_14 = arith.constant 0 : index
    %c0_15 = arith.constant 0 : index
    %c0_16 = arith.constant 0 : index
    %21 = vector.load %arg4[%c0_14, %c0_15, %c0_16] : memref<3x16x8xf32, #tpu.memory_space<vmem>>, vector<1x16x8xf32>
    %22 = vector.shape_cast %21 : vector<1x16x8xf32> to vector<16x8xf32>
    %23 = vector.extract_strided_slice %20 {offsets = [0, 0], sizes = [8, 12], strides = [1, 1]} : vector<8x14xf32> to vector<8x12xf32>
    %cst_17 = arith.constant dense<0.000000e+00> : vector<16x12xf32>
    %24 = tpu.matmul %22, %23, %cst_17 {dimension_numbers = #tpu.dot_dimension_numbers<[1], [0], [0], [1], [0, 0, 1, 1], [], []>} : vector<16x8xf32>, vector<8x12xf32>, vector<16x12xf32> -> vector<16x12xf32>
    %c1_18 = arith.constant 1 : index
    %c0_19 = arith.constant 0 : index
    %c0_20 = arith.constant 0 : index
    %25 = vector.load %arg4[%c1_18, %c0_19, %c0_20] : memref<3x16x8xf32, #tpu.memory_space<vmem>>, vector<1x16x8xf32>
    %26 = vector.shape_cast %25 : vector<1x16x8xf32> to vector<16x8xf32>
    %27 = vector.extract_strided_slice %20 {offsets = [0, 1], sizes = [8, 12], strides = [1, 1]} : vector<8x14xf32> to vector<8x12xf32>
    %cst_21 = arith.constant dense<0.000000e+00> : vector<16x12xf32>
    %28 = tpu.matmul %26, %27, %cst_21 {dimension_numbers = #tpu.dot_dimension_numbers<[1], [0], [0], [1], [0, 0, 1, 1], [], []>} : vector<16x8xf32>, vector<8x12xf32>, vector<16x12xf32> -> vector<16x12xf32>
    %29 = arith.addf %24, %28 : vector<16x12xf32>
    %c2_22 = arith.constant 2 : index
    %c0_23 = arith.constant 0 : index
    %c0_24 = arith.constant 0 : index
    %30 = vector.load %arg4[%c2_22, %c0_23, %c0_24] : memref<3x16x8xf32, #tpu.memory_space<vmem>>, vector<1x16x8xf32>
    %31 = vector.shape_cast %30 : vector<1x16x8xf32> to vector<16x8xf32>
    %32 = vector.extract_strided_slice %20 {offsets = [0, 2], sizes = [8, 12], strides = [1, 1]} : vector<8x14xf32> to vector<8x12xf32>
    %cst_25 = arith.constant dense<0.000000e+00> : vector<16x12xf32>
    %33 = tpu.matmul %31, %32, %cst_25 {dimension_numbers = #tpu.dot_dimension_numbers<[1], [0], [0], [1], [0, 0, 1, 1], [], []>} : vector<16x8xf32>, vector<8x12xf32>, vector<16x12xf32> -> vector<16x12xf32>
    %34 = arith.addf %29, %33 : vector<16x12xf32>
    %c0_26 = arith.constant 0 : index
    %c0_27 = arith.constant 0 : index
    %35 = vector.load %arg5[%c0_26, %c0_27] : memref<16x1xf32, #tpu.memory_space<vmem>>, vector<16x1xf32>
    %36 = vector.broadcast %35 : vector<16x1xf32> to vector<16x12xf32>
    %37 = arith.addf %34, %36 : vector<16x12xf32>
    %cst_28 = arith.constant 0.000000e+00 : f32
    %38 = vector.broadcast %cst_28 : f32 to vector<16x12xf32>
    %39 = arith.maximumf %37, %38 : vector<16x12xf32>
    %c0_29 = arith.constant 0 : index
    %c0_30 = arith.constant 0 : index
    %40 = vector.load %arg6[%c0_29, %c0_30] : memref<3x16xf32, #tpu.memory_space<vmem>>, vector<3x16xf32>
    %cst_31 = arith.constant dense<0.000000e+00> : vector<3x12xf32>
    %41 = tpu.matmul %40, %39, %cst_31 {dimension_numbers = #tpu.dot_dimension_numbers<[1], [0], [0], [1], [0, 0, 1, 1], [], []>} : vector<3x16xf32>, vector<16x12xf32>, vector<3x12xf32> -> vector<3x12xf32>
    %c0_32 = arith.constant 0 : index
    %c0_33 = arith.constant 0 : index
    %42 = vector.load %arg7[%c0_32, %c0_33] : memref<3x1xf32, #tpu.memory_space<vmem>>, vector<3x1xf32>
    %43 = vector.broadcast %42 : vector<3x1xf32> to vector<3x12xf32>
    %44 = arith.addf %41, %43 : vector<3x12xf32>
    %45 = vector.extract_strided_slice %44 {offsets = [0, 0], sizes = [1, 12], strides = [1, 1]} : vector<3x12xf32> to vector<1x12xf32>
    %46 = vector.extract_strided_slice %44 {offsets = [1, 0], sizes = [1, 12], strides = [1, 1]} : vector<3x12xf32> to vector<1x12xf32>
    %47 = arith.maximumf %45, %46 : vector<1x12xf32>
    %48 = vector.extract_strided_slice %44 {offsets = [2, 0], sizes = [1, 12], strides = [1, 1]} : vector<3x12xf32> to vector<1x12xf32>
    %49 = arith.maximumf %47, %48 : vector<1x12xf32>
    %50 = vector.broadcast %49 : vector<1x12xf32> to vector<3x12xf32>
    %51 = arith.subf %44, %50 : vector<3x12xf32>
    %52 = math.exp %51 : vector<3x12xf32>
    %53 = vector.extract_strided_slice %52 {offsets = [0, 0], sizes = [1, 12], strides = [1, 1]} : vector<3x12xf32> to vector<1x12xf32>
    %54 = vector.extract_strided_slice %52 {offsets = [1, 0], sizes = [1, 12], strides = [1, 1]} : vector<3x12xf32> to vector<1x12xf32>
    %55 = arith.addf %53, %54 : vector<1x12xf32>
    %56 = vector.extract_strided_slice %52 {offsets = [2, 0], sizes = [1, 12], strides = [1, 1]} : vector<3x12xf32> to vector<1x12xf32>
    %57 = arith.addf %55, %56 : vector<1x12xf32>
    %58 = math.log %57 : vector<1x12xf32>
    %59 = vector.broadcast %58 : vector<1x12xf32> to vector<3x12xf32>
    %60 = arith.subf %51, %59 : vector<3x12xf32>
    %c0_34 = arith.constant 0 : index
    %c0_35 = arith.constant 0 : index
    %c0_36 = arith.constant 0 : index
    %61 = vector.load %arg8[%c0_34, %c0_35, %c0_36] : memref<1x3x12xf32, #tpu.memory_space<vmem>>, vector<1x3x12xf32>
    %62 = vector.shape_cast %61 : vector<1x3x12xf32> to vector<3x12xf32>
    %63 = vector.shape_cast %60 : vector<3x12xf32> to vector<1x3x12xf32>
    tpu.vector_store %arg8[%c0_34, %c0_35, %c0_36], %63 {strides = array<i32>} : memref<1x3x12xf32, #tpu.memory_space<vmem>>, vector<1x3x12xf32>,
    return
  }
  func.func @transform_0(%arg0: i32) -> (i32, i32, i32) {
    %c0_i32 = arith.constant 0 : i32
    %c0_i32_0 = arith.constant 0 : i32
    %c0_i32_1 = arith.constant 0 : i32
    return %arg0, %c0_i32, %c0_i32_0 : i32, i32, i32
  }
  func.func @transform_1(%arg0: i32) -> (i32, i32, i32) {
    %c0_i32 = arith.constant 0 : i32
    %c0_i32_0 = arith.constant 0 : i32
    %c0_i32_1 = arith.constant 0 : i32
    %c0_i32_2 = arith.constant 0 : i32
    return %c0_i32, %c0_i32_0, %c0_i32_1 : i32, i32, i32
  }
  func.func @transform_2(%arg0: i32) -> (i32, i32) {
    %c0_i32 = arith.constant 0 : i32
    %c0_i32_0 = arith.constant 0 : i32
    %c0_i32_1 = arith.constant 0 : i32
    return %c0_i32, %c0_i32_0 : i32, i32
  }
  func.func @transform_3(%arg0: i32) -> (i32, i32, i32) {
    %c0_i32 = arith.constant 0 : i32
    %c0_i32_0 = arith.constant 0 : i32
    %c0_i32_1 = arith.constant 0 : i32
    %c0_i32_2 = arith.constant 0 : i32
    return %c0_i32, %c0_i32_0, %c0_i32_1 : i32, i32, i32
  }
  func.func @transform_4(%arg0: i32) -> (i32, i32) {
    %c0_i32 = arith.constant 0 : i32
    %c0_i32_0 = arith.constant 0 : i32
    %c0_i32_1 = arith.constant 0 : i32
    return %c0_i32, %c0_i32_0 : i32, i32
  }
  func.func @transform_5(%arg0: i32) -> (i32, i32) {
    %c0_i32 = arith.constant 0 : i32
    %c0_i32_0 = arith.constant 0 : i32
    %c0_i32_1 = arith.constant 0 : i32
    return %c0_i32, %c0_i32_0 : i32, i32
  }
  func.func @transform_6(%arg0: i32) -> (i32, i32) {
    %c0_i32 = arith.constant 0 : i32
    %c0_i32_0 = arith.constant 0 : i32
    %c0_i32_1 = arith.constant 0 : i32
    return %c0_i32, %c0_i32_0 : i32, i32
  }
  func.func @transform_7(%arg0: i32) -> (i32, i32, i32) {
    %c0_i32 = arith.constant 0 : i32
    %c0_i32_0 = arith.constant 0 : i32
    %c0_i32_1 = arith.constant 0 : i32
    return %arg0, %c0_i32, %c0_i32_0 : i32, i32, i32
  }
}

</mosaic_0001>

<bundles_post_ra>
// kernel: _lambda_.1
= control target key start
LH: loop header
LB: loop body
LE: loop exit
PB: predicated region body
PF: predicated region fallthrough
CT: control target
= control target key end

     0   :  { %12 = vsyncpa [#allocation3], 0  ;;  %s1776_s0 = inlined_call_operand.hbm [shape: f32[2,4,16], index: 0, kind: input, shape index: {}]   ;;  %s1777_s1 = inlined_call_operand.hbm [shape: f32[3,8,4], index: 1, kind: input, shape index: {}]   ;;  %s1778_s2 = inlined_call_operand.hbm [shape: f32[8,1], index: 2, kind: input, shape index: {}]   ;;  %s1779_s3 = inlined_call_operand.hbm [shape: f32[3,16,8], index: 3, kind: input, shape index: {}]   ;;  %s1780_s4 = inlined_call_operand.hbm [shape: f32[16,1], index: 4, kind: input, shape index: {}]   ;;  %s1781_s5 = inlined_call_operand.vmem [shape: f32[3,16], index: 5, kind: input, shape index: {}]   ;;  %s1782_s6 = inlined_call_operand.vmem [shape: f32[3,1], index: 6, kind: input, shape index: {}]   ;;  %s1783_s7 = inlined_call_operand.vmem [shape: f32[2,3,12], index: 7, kind: output, shape index: {}]  }
   0x1   :  { %14 = vsyncpa [#allocation3 + $0x1], 0 }
   0x2   :  { %15 = vsyncpa [#allocation5], 0 }
   0x3   :  { %16 = vsyncpa [#allocation8], 0  ;;  %s1514_s24 = smov 0   ;;  %s1516_s25 = smov 0  }
   0x4   :  { %s1518_s26 = smov 0   ;;  %s1520_s27 = smov 0  }
   0x5 LB: > { %s1461_s28 = smov [#allocation4]   ;;  %s1535_s30 = sadd.s32 4294967295, %s1459_s27   ;;  %s1459_s27 = sphi %s1520_s27, %s1800_s27   ;;  %s1455_s26 = sphi %s1518_s26, %s1799_s26   ;;  %s1451_s25 = sphi %s1516_s25, %s1798_s25   ;;  %s1447_s24 = sphi %s1514_s24, %s1797_s24  }
   0x6   : > { %s217_s29 = sshll.u32 %s1461_s28, 4  ;;  %p1089_p0 = scmp.ge.s32.totalorder %s1459_s27, 1  ;;  %s1540_s29 = int_to_ptr.vmem [resolvable:$true] %s217_s29 }
   0x7   : > { %p1784_p1 = scmp.eq.s32.totalorder %s1535_s30, 0  ;;  %p205_p2 = scmp.lt.s32.totalorder %s1459_s27, 3 }
   0x8   : > { %s1462_s9 = smov [#allocation7]   ;;  %s1463_s12 = smov [#allocation6]  }
   0x9   : > { %p1542_p3 = pnand %p1089_p0, %p205_p2  ;;  %s241_s10 = sshll.u32 %s1462_s9, 4  ;;  %s1554_s10 = int_to_ptr.vmem [resolvable:$true] %s241_s10 }
   0xa   : > { %s231_s13 = sshll.u32 %s1463_s12, 4  ;;  %s1275_s16 = scalar_lea.hbm %s1777_s1, 384  ;;  %s1556_s13 = int_to_ptr.vmem [resolvable:$true] %s231_s13 }
   0xb   : > { %s1786_s8 = scalar_select %p1542_p3, 1, 0 }
   0xc   : > { %p1199_p4 = pneg %p1542_p3  ;;  %p1276_p6 = scmp.ne.s32.totalorder %s1777_s1, %s1275_s16 }
   0xd   : > { %p1282_p10 = scmp.lt.u32.totalorder %s1275_s16, %s1777_s1 }
   0xe   : > { %p1550_p5 = pnand %p1199_p4, %p1784_p1 }
  0x10   : > { %p1566_p7 = pneg %p1550_p5 }
  0x12   : > { %p1278_p8 = pnand %p1566_p7, %p1276_p6 }
  0x14   : > { %p1279_p9 = pneg %p1278_p8 }
  0x16   : > { %p1284_p11 = pnand %p1282_p10, %p1279_p9 }
  0x18   : > { %1287 = shalt.err (!%p1284_p11)
}
  0x19   : > { %s1288_s22 = scalar_lea.vmem %s1540_s29, 384  ;;  %p1296_p2 = scmp.lt.s32.totalorder %s1540_s29, %s1540_s29 }
  0x1a   : > { %p1289_p12 = scmp.ne.s32.totalorder %s1540_s29, %s1288_s22  ;;  %p1297_p4 = scmp.lt.s32.totalorder %s1288_s22, %s1288_s22 }
  0x1c   : > { %p1291_p13 = pnand %p1289_p12, %p1566_p7  ;;  %p1298_p6 = por %p1297_p4, %p1296_p2 }
  0x1e   : > { %p1292_p0 = pneg %p1291_p13 }
  0x20   : > { %p1299_p8 = pnand %p1298_p6, %p1292_p0 }
  0x22   : > { %1302 = shalt.err (!%p1299_p8)
}
  0x23   : > { %s1464_s23 = smov 128   ;;  %s1465_s28 = smov 8  }
  0x24   : > { %1202 = dma.hbm_to_vmem [thread:$0]  (!%p1550_p5), %s1777_s1, 384, %s1540_s29, [#allocation5], %s1464_s23, %s1464_s23, %s1465_s28  }
  0x25   : > { %s1303_s16 = scalar_lea.hbm %s1779_s3, 768 }
  0x26   : > { %p1304_p9 = scmp.ne.s32.totalorder %s1779_s3, %s1303_s16  ;;  %p1310_p12 = scmp.lt.u32.totalorder %s1303_s16, %s1779_s3 }
  0x28   : > { %p1306_p10 = pnand %p1304_p9, %p1566_p7 }
  0x2a   : > { %p1307_p11 = pneg %p1306_p10 }
  0x2c   : > { %p1312_p13 = pnand %p1310_p12, %p1307_p11 }
  0x2e   : > { %1315 = shalt.err (!%p1312_p13)
}
  0x2f   : > { %s1316_s29 = scalar_lea.vmem %s1554_s10, 768  ;;  %p1324_p6 = scmp.lt.s32.totalorder %s1554_s10, %s1554_s10 }
  0x30   : > { %p1317_p0 = scmp.ne.s32.totalorder %s1554_s10, %s1316_s29  ;;  %p1325_p8 = scmp.lt.s32.totalorder %s1316_s29, %s1316_s29 }
  0x32   : > { %p1319_p2 = pnand %p1317_p0, %p1566_p7  ;;  %p1326_p9 = por %p1325_p8, %p1324_p6 }
  0x34   : > { %p1320_p4 = pneg %p1319_p2 }
  0x36   : > { %p1327_p10 = pnand %p1326_p9, %p1320_p4 }
  0x38   : > { %1330 = shalt.err (!%p1327_p10)
}
  0x39   : > { %1208 = dma.hbm_to_vmem [thread:$0]  (!%p1550_p5), %s1779_s3, 768, %s1554_s10, [#allocation8], %s1464_s23, %s1464_s23, %s1465_s28  }
  0x3a   : > { %s1331_s15 = scalar_lea.hbm %s1778_s2, 128 }
  0x3b   : > { %p1332_p11 = scmp.ne.s32.totalorder %s1778_s2, %s1331_s15  ;;  %p1338_p0 = scmp.lt.u32.totalorder %s1331_s15, %s1778_s2 }
  0x3d   : > { %p1334_p12 = pnand %p1332_p11, %p1566_p7 }
  0x3f   : > { %p1335_p13 = pneg %p1334_p12 }
  0x41   : > { %p1340_p2 = pnand %p1338_p0, %p1335_p13 }
  0x43   : > { %1343 = shalt.err (!%p1340_p2)
}
  0x44   : > { %s1344_s10 = scalar_lea.vmem %s1556_s13, 128  ;;  %p1352_p9 = scmp.lt.s32.totalorder %s1556_s13, %s1556_s13 }
  0x45   : > { %p1345_p4 = scmp.ne.s32.totalorder %s1556_s13, %s1344_s10  ;;  %p1353_p10 = scmp.lt.s32.totalorder %s1344_s10, %s1344_s10 }
  0x47   : > { %p1347_p6 = pnand %p1345_p4, %p1566_p7  ;;  %p1354_p11 = por %p1353_p10, %p1352_p9 }
  0x49   : > { %p1348_p8 = pneg %p1347_p6 }
  0x4b   : > { %p1355_p12 = pnand %p1354_p11, %p1348_p8 }
  0x4d   : > { %1358 = shalt.err (!%p1355_p12)
}
  0x4e   : > { %1205 = dma.hbm_to_vmem [thread:$0]  (!%p1550_p5), %s1778_s2, 128, %s1556_s13, [#allocation5]  }
  0x4f   : > { %s1466_s22 = smov [#allocation9]   ;;  %s1359_s15 = scalar_lea.hbm %s1780_s4, 256 }
  0x50   : > { %s254_s9 = sshll.u32 %s1466_s22, 4  ;;  %p1360_p13 = scmp.ne.s32.totalorder %s1780_s4, %s1359_s15  ;;  %s255_s9 = int_to_ptr.vmem [resolvable:$true] %s254_s9 }
  0x51   : > { %p1366_p4 = scmp.lt.u32.totalorder %s1359_s15, %s1780_s4 }
  0x52   : > { %p1362_p0 = pnand %p1360_p13, %p1566_p7 }
  0x54   : > { %p1363_p2 = pneg %p1362_p0 }
  0x56   : > { %p1368_p6 = pnand %p1366_p4, %p1363_p2 }
  0x58   : > { %1371 = shalt.err (!%p1368_p6)
}
  0x59   : > { %s1372_s13 = scalar_lea.vmem %s255_s9, 256  ;;  %p1380_p11 = scmp.lt.s32.totalorder %s255_s9, %s255_s9 }
  0x5a   : > { %p1373_p8 = scmp.ne.s32.totalorder %s255_s9, %s1372_s13  ;;  %p1381_p12 = scmp.lt.s32.totalorder %s1372_s13, %s1372_s13 }
  0x5c   : > { %p1375_p9 = pnand %p1373_p8, %p1566_p7  ;;  %p1382_p1 = por %p1381_p12, %p1380_p11 }
  0x5e   : > { %p1376_p10 = pneg %p1375_p9 }
  0x60   : > { %p1383_p3 = pnand %p1382_p1, %p1376_p10 }
  0x62   : > { %1386 = shalt.err (!%p1383_p3)
}
  0x63   : > { %1211 = dma.hbm_to_vmem [thread:$0]  (!%p1550_p5), %s1780_s4, 256, %s255_s9, [#allocation8], %s1464_s23, %s1464_s23, %s1465_s28  }
  0x64   : > { %s1661_s11 = sadd.s32 1, %s1459_s27   ;;  %s29_s19 = sadd.s32 1, %s1455_s26 }
  0x65   : > { %s26_s29 = ssub.s32 %s1459_s27, %s1661_s11  ;;  %p36_p1 = scmp.ne.s32.totalorder %s1455_s26, %s1451_s25 }
  0x66   : > { %p27_p3 = scmp.eq.s32.totalorder %s26_s29, 0  ;;  %p37_p7 = scmp.eq.s32.totalorder %s1459_s27, 0 }
  0x67   : > { %p42_p13 = scmp.ne.s32.totalorder %s1451_s25, %s1447_s24  ;;  %p1220_p0 = scmp.lt.s32.totalorder %s1459_s27, 2 }
  0x68   : > { %s1673_s22 = scalar_select %p27_p3, %s1455_s26, %s29_s19  }
  0x69   : > { %p38_p2 = por %p37_p7, %p36_p1  ;;  %p1789_p4 = scmp.eq.s32.totalorder %s1535_s30, 0 }
  0x6a   : > { %s274_s14 = sand.u32 1, %s1455_s26   ;;  %s1096_s23 = sshll.u32 %s1459_s27, 6 }
  0x6b   : > { %p1677_p6 = por %p1789_p4, %p42_p13  ;;  %s1095_s28 = sshll.u32 %s274_s14, 2 }
  0x6c   : > { %s1686_s16 = scalar_lea.hbm %s1776_s0, %s1096_s23  ;;  %s278_s24 = scalar_lea.vmem [#allocation2], %s1095_s28 }
  0x6d   : > { %s285_s17 = sshll.u32 %s278_s24, 4  ;;  %p1688_p5 = pnand %p1220_p0, %p38_p2  ;;  %s1692_s17 = int_to_ptr.vmem [resolvable:$true] %s285_s17 }
  0x6e   : > { %s275_s27 = scalar_lea.sflag [#allocation3], %s274_s14  ;;  %s1387_s20 = scalar_lea.hbm %s1686_s16, 64 }
  0x6f   : > { %p1388_p8 = scmp.ne.s32.totalorder %s1686_s16, %s1387_s20  ;;  %p1389_p9 = pneg %p1688_p5 }
  0x70   : > { %s1392_s21 = scalar_lea.hbm %s1776_s0, 128  ;;  %p1393_p12 = scmp.lt.u32.totalorder %s1686_s16, %s1776_s0 }
  0x71   : > { %p1390_p10 = pnand %p1389_p9, %p1388_p8  ;;  %p1394_p1 = scmp.lt.u32.totalorder %s1392_s21, %s1387_s20 }
  0x72   : > { %p1396_p7 = scmp.lt.u32.totalorder %s1387_s20, %s1686_s16 }
  0x73   : > { %p1391_p11 = pneg %p1390_p10  ;;  %p1395_p3 = por %p1394_p1, %p1393_p12 }
  0x75   : > { %p1397_p13 = por %p1396_p7, %p1395_p3 }
  0x77   : > { %p1398_p0 = pnand %p1397_p13, %p1391_p11 }
  0x79   : > { %1401 = shalt.err (!%p1398_p0)
}
  0x7a   : > { %s1402_s14 = scalar_lea.vmem %s1692_s17, 64  ;;  %s1467_s23 = smov [#allocation2]  }
  0x7b   : > { %p1403_p2 = scmp.ne.s32.totalorder %s1692_s17, %s1402_s14  ;;  %s1407_s28 = sshll.u32 %s1467_s23, 4  ;;  %s1408_s28 = int_to_ptr.vmem [resolvable:$false] %s1407_s28 }
  0x7c   : > { %s1409_s9 = scalar_lea.vmem %s1408_s28, 128  ;;  %p1410_p10 = scmp.lt.s32.totalorder %s1692_s17, %s1408_s28 }
  0x7d   : > { %p1405_p4 = pnand %p1403_p2, %p1389_p9  ;;  %p1411_p12 = scmp.lt.s32.totalorder %s1409_s9, %s1402_s14 }
  0x7f   : > { %p1406_p8 = pneg %p1405_p4  ;;  %p1412_p1 = por %p1411_p12, %p1410_p10 }
  0x81   : > { %p1413_p3 = pnand %p1412_p1, %p1406_p8 }
  0x83   : > { %1416 = shalt.err (!%p1413_p3)
}
  0x84   : > { %1215 = dma.hbm_to_vmem [thread:$0]  (!%p1688_p5), %s1686_s16, 64, %s1692_s17, %s275_s27  }
  0x85   : > { %p1792_p11 = scmp.ne.s32.totalorder %s1786_s8, 0 }
  0x86   : > { %s296_s15 = sand.u32 (!%p1792_p11), 1, %s1451_s25  }
  0x87   : > { %294 = sbr.rel (%p1792_p11) target bundleno = 1108 (0x454), region = 48  ;;  %s1098_s24 = sshll.u32 (!%p1792_p11), %s296_s15, 2 }
  0x88   : > { %s297_s20 = scalar_lea.sflag (!%p1792_p11), [#allocation3], %s296_s15  ;;  %s300_s13 = scalar_lea.vmem (!%p1792_p11), [#allocation2], %s1098_s24 }
  0x8e   : > { %1434 = dma.done.wait (%p1677_p6), %s297_s20, 64  }
  0x8f   : > { %1436 = vsyncadd (%p1677_p6), %s297_s20, 4294967232  ;;  %p1793_p9 = scmp.eq.s32.totalorder %s1535_s30, 0 }
  0x91   : > { %1438 = dma.done.wait (%p1793_p9), [#allocation5], 512   ;;  %p1794_p7 = pmov %p1793_p9 }
  0x93   : > { %1440 = vsyncadd (%p1794_p7), [#allocation5], 4294966784  ;;  %p1795_p5 = pmov %p1794_p7 }
  0x95   : > { %1442 = dma.done.wait (%p1795_p5), [#allocation8], 1024   ;;  %p1796_p13 = pmov %p1795_p5 }
  0x96   : > { %v1468_v0 = vmov 0.0   ;;  %vm1469_vm0 = vmmov 0   ;;  %v1470_v1 = vmov 0   ;;  %vm361_vm1 = vcmask 1043456   ;;  %v350_v2 = vld [vmem:[%s300_s13] sm:$0xf] }
  0x97   : > { %1444 = vsyncadd (%p1796_p13), [#allocation8], 4294966272  ;;  %1137 = vmatprep.subr.mxu0 %v1468_v0  ;;  %1142 = vmatprep.subr.mxu1 %v1468_v0  ;;  %vm357_vm2 = vcmask 31744   ;;  %v351_v3 = vld [vmem:[#allocation4] sm:$0xff]  ;;  %s1471_s8 = smov 127   ;;  %v589_v4 = vld [vmem:[#allocation6] sm:$0xff]  ;;  %v962_v42 = vlaneseq }
  0x98   : > { %1139 = vmatprep.mubr.msk.f32.mxu0 %vm1469_vm0, %v1468_v0  ;;  %1144 = vmatprep.mubr.msk.f32.mxu1 %vm1469_vm0, %v1468_v0  ;;  %s1472_s12 = smov 126   ;;  %v353_v5 = vld [vmem:[#allocation4 + $0x8] sm:$0xff]  ;;  %v510_v7 = vld [vmem:[#allocation4 + $0x10] sm:$0xff]  ;;  %vm606_vm3 = vcmask 64512   ;;  %v875_v22 = vld [vmem:[%s1782_s6] sm:$0x7] }
  0x99   : > { %1269 = vset.pattern.permute.xlu1 %v1470_v1  ;;  %1270 = vset.pattern.permute.xlu0 %v1470_v1  ;;  %v600_v11 = vld [vmem:[#allocation7 + $0x10] sm:$0xff]  ;;  %v859_v23 = vld [vmem:[#allocation9 + $0x8] sm:$0xff]  ;;  %v597_v26 = vld [vmem:[#allocation7] sm:$0xff]  ;;  %v1473_v31 = vmov 0.0|0.0   ;;  %vm881_vm4 = vcmask 130048   ;;  %v963_v46 = vshrl.u32 %v962_v42, 7 }
  0x9a   : > { %355 = vrot.lane.b32.xlu0 %v350_v2, %s1471_s8  ;;  %1143 = vmatpush3.msk.msra.mxu1 %vm361_vm1, %v350_v2  ;;  %v858_v21 = vld [vmem:[#allocation9] sm:$0xff]  ;;  %v601_v25 = vld [vmem:[#allocation7 + $0x18] sm:$0xff]  ;;  %v598_v28 = vld [vmem:[#allocation7 + $0x8] sm:$0xff]  ;;  %p346_p6 = scmp.lt.s32.totalorder %s1535_s30, 1  ;;  %vm983_vm5 = vcmask 92160  }
  0x9b   : > { %1145 = vmatmul.mubr.msk.f32.vlgmr.msra.gmra.mrb[0].mxu1 %vm357_vm2, %v351_v3  ;;  %592 = vperm.xlu1 %1269, %v589_v4   ;;  %v770_v29 = vld [vmem:[#allocation7 + $0x20] sm:$0xff]  ;;  %v771_v30 = vld [vmem:[#allocation7 + $0x28] sm:$0xff]  ;;  %v874_v41 = vld [vmem:[%s1781_s5] sm:$0x7]  ;;  %v964_v51 = vsub.s32 0, %v963_v46 }
  0x9c   : > { %1154 = vmatprep.mubr.msk.f32.mxu1 %vm606_vm3, %v600_v11  ;;  %s1802_s30 = smov (!%p346_p6, %s1535_s30), 1 }
  0x9d   : > { %s1103_s10 = sshll.u32 %s1802_s30, 2 }
  0x9e   : > { %511 = vrot.lane.b32.xlu0 %v350_v2, %s1472_s12  ;;  %s349_s29 = scalar_lea.vmem %s1783_s7, %s1103_s10 }
 0x10c   : > { %v356_v6 = vpop.permute.xlu0 %355 }
 0x10d   : > { %1138 = vmatpush3.msk.msra.mxu0 %vm361_vm1, %v356_v6 }
 0x10e   : > { %1140 = vmatmul.mubr.msk.f32.vlgmr.msra.gmra.mrb[0].mxu0 %vm357_vm2, %v353_v5  ;;  %1147 = vmatprep.subr.mxu0 %v1468_v0 }
 0x10f   : > { %1149 = vmatprep.mubr.msk.f32.mxu0 %vm1469_vm0, %v1468_v0 }
 0x110   : > { %v512_v8 = vpop.permute.xlu0 %511 }
 0x111   : > { %1148 = vmatpush3.msk.msra.mxu0 %vm361_vm1, %v512_v8 }
 0x112   : > { %1150 = vmatmul.mubr.msk.f32.vlgmr.msra.gmra.mrb[2].mxu0 %vm357_vm2, %v510_v7  ;;  %1174 = vmatprep.subr.bf16.mxu0 %v1473_v31 }
 0x113   : > { %1171 = vmatprep.mubr.msk.f32.mxu0 %vm1469_vm0, %v1468_v0 }
 0x11a   : > { %v593_v16 = vpop.permute.xlu1 %592 }
 0x16e   : > { %v505_v9 = vpop.f32.mrb[0].mxu1 }
 0x16f   : > { %v1146_v10 = vpop.f32.mrb[1].mxu1 }
 0x1e1   : > { %v430_v12 = vpop.f32.mrb[0].mxu0 }
 0x1e2   : > { %v506_v13 = vadd.f32 %v505_v9, %v430_v12  ;;  %v1141_v14 = vpop.f32.mrb[1].mxu0 }
 0x1e5   : > { %v584_v15 = vpop.f32.mrb[2].mxu0 }
 0x1e6   : > { %v588_v17 = vadd.f32 %v584_v15, %v506_v13  ;;  %v1151_v18 = vpop.f32.mrb[3].mxu0 }
 0x1e8   : > { %v595_v19 = vadd.f32 %v593_v16, %v588_v17 }
 0x1ea   : > { %v596_v20 = vmax.f32 %v595_v19, 0.0 }
 0x1ec   : > { %772 = vrot.lane.b32.xlu0 %v596_v20, %s1472_s12  ;;  %603 = vrot.lane.b32.xlu1 %v596_v20, %s1471_s8 }
 0x1f0   : > { %862 = vperm.xlu1 %1269, %v858_v21   ;;  %867 = vperm.xlu0 %1270, %v859_v23  }
 0x1f4   : > { %878 = vperm.xlu1 %1269, %v875_v22  }
 0x25e   : > { %v604_v24 = vpop.permute.xlu1 %603  ;;  %v773_v27 = vpop.permute.xlu0 %772 }
 0x25f   : > { %1152 = vmatprep.subr.mxu1 %v604_v24 }
 0x260   : > { %1153 = vmatpush3.msra.mxu1 %v604_v24 }
 0x261   : > { %1155 = vmatmul.mubr.msk.f32.vlgmr.msra.gmra.mrb[2].mxu1 %vm606_vm3, %v601_v25  ;;  %1157 = vmatprep.subr.mxu1 %v596_v20 }
 0x262   : > { %1158 = vmatpush3.msra.mxu1 %v596_v20  ;;  %1159 = vmatprep.mubr.msk.f32.mxu1 %vm606_vm3, %v597_v26 }
 0x263   : > { %1162 = vmatprep.subr.mxu1 %v773_v27 }
 0x269   : > { %1160 = vmatmul.mubr.msk.f32.vlgmr.msra.gmra.mrb[2].mxu1 %vm606_vm3, %v598_v28 }
 0x26a   : > { %1163 = vmatpush3.msra.mxu1 %v773_v27  ;;  %1164 = vmatprep.mubr.msk.f32.mxu1 %vm606_vm3, %v770_v29 }
 0x26f   : > { %v868_v32 = vpop.permute.xlu0 %867  ;;  %v863_v34 = vpop.permute.xlu1 %862 }
 0x271   : > { %1165 = vmatmul.mubr.msk.f32.vlgmr.msra.gmra.mrb[2].mxu1 %vm606_vm3, %v771_v30 }
 0x273   : > { %v879_v43 = vpop.permute.xlu1 %878 }
 0x344   : > { %v1166_v33 = vpop.f32.mrb[2].mxu1 }
 0x345   : > { %v871_v35 = vadd.f32 %v1166_v33, %v868_v32  ;;  %v847_v36 = vpop.f32.mrb[3].mxu1 }
 0x346   : > { %v870_v37 = vadd.f32 %v863_v34, %v847_v36 }
 0x347   : > { %v873_v38 = vmax.f32 %v871_v35, 0.0 }
 0x348   : > { %v872_v39 = vmax.f32 %v870_v37, 0.0 }
 0x34a   : > { %v1175_v40 = vpack.c.bf16 %v873_v38, %v872_v39 }
 0x34c   : > { %1176 = vmatpush3.bf16.msra.mxu0 %v1175_v40 }
 0x34f   : > { %1172 = vmatmul.mubr.msk.f32.vlgmr.msra.gmra.mrb[4].mxu0 %vm881_vm4, %v874_v41 }
 0x422   : > { %v951_v44 = vpop.f32.mrb[4].mxu0 }
 0x423   : > { %v952_v45 = vadd.f32 %v951_v44, %v879_v43  ;;  %v1173_v47 = vpop.f32.mrb[5].mxu0 }
 0x425   : > { %v956_v48 = vrot.slane %v952_v45, 1  ;;  %v959_v50 = vrot.slane %v952_v45, 2 }
 0x427   : > { %v958_v49 = vmax.f32 %v952_v45, %v956_v48 }
 0x429   : > { %v961_v52 = vmax.f32 %v958_v49, %v959_v50 }
 0x42b   : > { %v965_v53 = vrot.slane %v961_v52, %v964_v51 }
 0x42d   : > { %v966_v54 = vsub.f32 %v952_v45, %v965_v53 }
 0x42f   : > { %v967_v55 = vmul.f32 1.442695, %v966_v54 }
 0x431   : > { %1271 = vpow2.f32 %v967_v55 }
 0x43b   : > { %v1272_v56 = vpop.eup %1271 }
 0x43c   : > { %v970_v57 = vrot.slane %v1272_v56, 1  ;;  %v973_v59 = vrot.slane %v1272_v56, 2 }
 0x43e   : > { %v972_v58 = vadd.f32 %v1272_v56, %v970_v57 }
 0x440   : > { %v975_v60 = vadd.f32 %v973_v59, %v972_v58 }
 0x442   : > { %1273 = vlog2.f32 %v975_v60 }
 0x44c   : > { %v1274_v61 = vpop.eup %1273 }
 0x44d   : > { %v977_v62 = vmul.f32 0.6931472, %v1274_v61 }
 0x44f   : > { %v981_v63 = vrot.slane %v977_v62, %v964_v51 }
 0x451   : > { %v982_v0 = vsub.f32 %v966_v54, %v981_v63 }
 0x453   : > { %984 = vst.msk [vmem:[%s349_s29] sm:$0x7] %vm983_vm5, %v982_v0 }
 0x454 PF: > { %p19_p0 = scmp.ge.s32.totalorder %s1661_s11, 4   ;;  %s1797_s24 = smov %s1451_s25 }
 0x455   : > { %s1798_s25 = smov %s1455_s26  ;;  %s1799_s26 = smov %s1673_s22 }
 0x456   : > { %s1800_s27 = smov %s1661_s11  ;;  %21 = sbr.rel (!%p19_p0) target bundleno = 5 (0x5), region = 108 }
 0x45d   :  { %1004 = vsyncpa [#allocation3], 1 }
 0x45e   :  { %1006 = vsyncpa [#allocation3 + $0x1], 1 }
 0x45f   :  { %1007 = vsyncpa [#allocation5], 1 }
 0x460   :  { %1008 = vsyncpa [#allocation8], 1 }

</bundles_post_ra>
